<compile_context>
chip_gen: v5e
topology: v5e:2x2
jax: 0.10.0
libtpu: 0.0.40
codegen_flags: <defaults>
</compile_context>

<pallas_src>
import functools

import jax
import jax.numpy as jnp
from jax.experimental import pallas as pl
from jax.experimental.pallas import tpu as pltpu


# ---------------------------------------------------------------------------
# Pallas kernel: one (TB, S*D) batch tile -> (TB, 1) logits.
# All matmuls are plain 2D dots (batch folded into M); no transposes/reshapes.
# ---------------------------------------------------------------------------
def the_model_kernel(eps,
                     emb1_ref, emb2_ref,
                     w1a_ref, b1a_ref, w1b_ref, b1b_ref,      # compress1 (block-diag over S)
                     w2a_ref, b2a_ref, w2b_ref, b2b_ref,      # compress2 (block over cd)
                     gamma_ref,                               # RMSNorm weight, cd-major perm
                     wha_ref, bha_ref, whb_ref, bhb_ref,      # head
                     out_ref):
    mxu = w1a_ref.dtype          # bf16 MXU operand dtype; accumulation is f32.

    # x = emb1 - emb2, already flattened to (TB, S*D) by the wrapper.
    x = emb1_ref[...] - emb2_ref[...]

    # ---- compress1: Linear(D->cd) -> relu -> (dropout=id) -> Linear(cd->cd)
    # applied per sequence slot via block-diagonal weights -> one big matmul.
    h = jnp.dot(x.astype(mxu), w1a_ref[...], preferred_element_type=jnp.float32)
    h = jnp.maximum(h + b1a_ref[...], 0.0)
    h = jnp.dot(h.astype(mxu), w1b_ref[...], preferred_element_type=jnp.float32)
    h = h + b1b_ref[...]                                       # (TB, S*cd)

    # ---- compress2: contracts the sequence axis; the reference's
    # permute(0,2,1) is folded into w2a_big's layout, so the result is the
    # cd-major flattening (index c*cs + t).
    g = jnp.dot(h.astype(mxu), w2a_ref[...], preferred_element_type=jnp.float32)
    g = jnp.maximum(g + b2a_ref[...], 0.0)
    g = jnp.dot(g.astype(mxu), w2b_ref[...], preferred_element_type=jnp.float32)
    g = g + b2b_ref[...]                                       # (TB, cd*cs)

    # ---- RMSNorm over the flattened features (mean is permutation invariant;
    # gamma was pre-permuted to cd-major order on the host).
    ms = jnp.mean(g * g, axis=-1, keepdims=True)
    normed = g * jax.lax.rsqrt(ms + eps) * gamma_ref[...]

    # ---- head: Linear(cd*cs -> n_out) -> relu -> Linear(n_out -> 1)
    # Final projection as a VPU multiply + lane reduction (N=1 MXU matmul
    # would waste the systolic array).
    hh = jnp.dot(normed.astype(mxu), wha_ref[...], preferred_element_type=jnp.float32)
    hh = jnp.maximum(hh + bha_ref[...], 0.0)
    logits = jnp.sum(hh * whb_ref[...], axis=-1, keepdims=True) + bhb_ref[...]

    out_ref[...] = logits.astype(out_ref.dtype)                # (TB, 1)


# ---------------------------------------------------------------------------
# One-time host-side parameter rewrite: canonical (PyTorch-layout) params
# -> transpose-free, batch-folded kernel layout.
# ---------------------------------------------------------------------------
def _block_diag(w, n):
    """kron(eye(n), w): block-diagonal repetition; shape (n*din, n*dout)."""
    din, dout = w.shape
    eye = jnp.eye(n, dtype=w.dtype)
    return jnp.einsum('ab,io->aibo', eye, w).reshape(n * din, n * dout)


def prepare_kernel_params(params, mxu_dtype=jnp.bfloat16):
    D, cd = params['w1a'].shape
    S, cs = params['w2a'].shape
    n_out = params['wha'].shape[1]
    f32 = jnp.float32

    # compress1: same Linear applied to each of the S sequence slots.
    w1a_big = _block_diag(params['w1a'], S)                    # (S*D,  S*cd)
    w1b_big = _block_diag(params['w1b'], S)                    # (S*cd, S*cd)
    b1a_big = jnp.tile(params['b1a'].reshape(1, cd), (1, S))   # (1, S*cd)
    b1b_big = jnp.tile(params['b1b'].reshape(1, cd), (1, S))

    # compress2: contracts S.  Row index s*cd + c, column index c*cs + t
    # (cd-major) -> the permute(0,2,1)/permute-back pair becomes free.
    eye_cd = jnp.eye(cd, dtype=params['w2a'].dtype)
    w2a_big = jnp.einsum('st,cC->scCt', params['w2a'], eye_cd).reshape(S * cd, cd * cs)
    w2b_big = _block_diag(params['w2b'], cd)                   # (cd*cs, cd*cs)
    b2a_big = jnp.tile(params['b2a'].reshape(1, cs), (1, cd))
    b2b_big = jnp.tile(params['b2b'].reshape(1, cs), (1, cd))

    # Reference flattening is cs-major (t*cd + c); ours is cd-major (c*cs + t).
    gamma_perm = params['gamma'].reshape(cs, cd).T.reshape(1, cd * cs)
    wha_perm = (params['wha'].reshape(cs, cd, n_out)
                .transpose(1, 0, 2).reshape(cd * cs, n_out))

    return dict(
        w1a=w1a_big.astype(mxu_dtype), b1a=b1a_big.astype(f32),
        w1b=w1b_big.astype(mxu_dtype), b1b=b1b_big.astype(f32),
        w2a=w2a_big.astype(mxu_dtype), b2a=b2a_big.astype(f32),
        w2b=w2b_big.astype(mxu_dtype), b2b=b2b_big.astype(f32),
        gamma=gamma_perm.astype(f32),
        wha=wha_perm.astype(mxu_dtype),
        bha=params['bha'].reshape(1, n_out).astype(f32),
        whb=params['whb'].reshape(1, n_out).astype(f32),
        bhb=params['bhb'].reshape(1, 1).astype(f32),
    )


# ---------------------------------------------------------------------------
# Wrapper: batch-tiled grid over the batch dimension.
# ---------------------------------------------------------------------------
def the_model_forward(kparams, contig1, contig2, emb1, emb2, *,
                      eps=1e-6, block_batch=512):
    """Pallas implementation of theModel.forward (eval mode).

    `kparams` is the output of prepare_kernel_params.
    """
    del contig1, contig2                     # unused by the reference forward
    B, S, D = emb1.shape
    feat = S * D

    # (B, S, D) -> (B, S*D): free metadata reshape of contiguous HBM arrays.
    e1 = emb1.reshape(B, feat)
    e2 = emb2.reshape(B, feat)

    # Batch tile (multiple of 8 when tiling): double-buffered f32 input tiles
    # (2 inputs x 2 buffers x TB*feat*4B) stay far below v7x's 64 MiB VMEM.
    tb = B if B <= block_batch else block_batch
    pad = (-B) % tb
    if pad:
        e1 = jnp.pad(e1, ((0, pad), (0, 0)))
        e2 = jnp.pad(e2, ((0, pad), (0, 0)))
    bp = B + pad
    grid = (bp // tb,)

    weight_order = ('w1a', 'b1a', 'w1b', 'b1b',
                    'w2a', 'b2a', 'w2b', 'b2b',
                    'gamma', 'wha', 'bha', 'whb', 'bhb')
    weights = [kparams[k] for k in weight_order]

    data_spec = pl.BlockSpec((tb, feat), lambda i: (i, 0))
    weight_specs = [pl.BlockSpec(w.shape, lambda i: (0, 0)) for w in weights]

    logits = pl.pallas_call(
        functools.partial(the_model_kernel, eps),
        out_shape=jax.ShapeDtypeStruct((bp, 1), emb1.dtype),
        grid_spec=pltpu.PrefetchScalarGridSpec(
            num_scalar_prefetch=0,
            grid=grid,
            in_specs=[data_spec, data_spec] + weight_specs,
            out_specs=pl.BlockSpec((tb, 1), lambda i: (i, 0)),
        ),
        compiler_params=pltpu.CompilerParams(
            dimension_semantics=("parallel",)),
    )(e1, e2, *weights)

    return {'logits': logits[:B, 0]}          # squeeze(-1), crop padding


# ---------------------------------------------------------------------------
# Deterministic synthetic parameter construction (canonical PyTorch layout:
# Linear weights pre-transposed to (in_features, out_features)).
# ---------------------------------------------------------------------------
def make_params(key, d_emb, seqlen, cs, cd, n_output_values, dtype=jnp.float32):
    ks = jax.random.split(key, 8)
    scale = 0.05
    return {
        # compress1: mlp(d_emb, cd, cd)
        'w1a': scale * jax.random.normal(ks[0], (d_emb, cd), dtype),
        'b1a': jnp.zeros((1, cd), dtype),
        'w1b': scale * jax.random.normal(ks[1], (cd, cd), dtype),
        'b1b': jnp.zeros((1, cd), dtype),
        # compress2: mlp(seqlen, cs, cs)   (add_cls = False)
        'w2a': scale * jax.random.normal(ks[2], (seqlen, cs), dtype),
        'b2a': jnp.zeros((1, cs), dtype),
        'w2b': scale * jax.random.normal(ks[3], (cs, cs), dtype),
        'b2b': jnp.zeros((1, cs), dtype),
        # RMSNorm(cs*cd)
        'gamma': jnp.ones((1, cs * cd), dtype),
        # head: mlp(cs*cd, n_output_values, 1)
        'wha': scale * jax.random.normal(ks[4], (cs * cd, n_output_values), dtype),
        'bha': 0.01 * jax.random.normal(ks[5], (1, n_output_values), dtype),
        'whb': scale * jax.random.normal(ks[6], (n_output_values, 1), dtype),
        'bhb': 0.01 * jax.random.normal(ks[7], (1, 1), dtype),
    }


# ---------------------------------------------------------------------------
# Pure-JAX reference (mirrors the PyTorch forward exactly, canonical params).
# ---------------------------------------------------------------------------
def reference_forward(params, emb1, emb2, eps=1e-6):
    x = emb1 - emb2
    x = jnp.maximum(x @ params['w1a'] + params['b1a'], 0.0) @ params['w1b'] + params['b1b']
    x = jnp.transpose(x, (0, 2, 1))                                    # (B, cd, S)
    x = jnp.maximum(x @ params['w2a'] + params['b2a'], 0.0) @ params['w2b'] + params['b2b']
    x = jnp.transpose(x, (0, 2, 1))                                    # (B, cs, cd)
    x = x.reshape(x.shape[0], -1)
    x = x * jax.lax.rsqrt(jnp.mean(x * x, axis=-1, keepdims=True) + eps) * params['gamma']
    x = jnp.maximum(x @ params['wha'] + params['bha'], 0.0) @ params['whb'] + params['bhb']
    return x[:, 0]


if __name__ == "__main__":
    # config: d_emb=32, seqlen=8, cs=8, cd=16, n_output_values=16, add_cls=False
    B, S, D = 2, 8, 32
    cs, cd, n_out = 8, 16, 16
    dtype = jnp.float32

    key = jax.random.PRNGKey(0)
    kp, k1, k2, k3, k4 = jax.random.split(key, 5)

    params = make_params(kp, D, S, cs, cd, n_out, dtype)
    kparams = prepare_kernel_params(params, mxu_dtype=jnp.bfloat16)

    emb1 = jax.random.normal(k1, (B, S, D), dtype)
    emb2 = jax.random.normal(k2, (B, S, D), dtype)
    contig1 = jax.random.normal(k3, (B, S), dtype)   # unused by forward
    contig2 = jax.random.normal(k4, (B, S), dtype)   # unused by forward

    out = the_model_forward(kparams, contig1, contig2, emb1, emb2)
    logits = jax.block_until_ready(out['logits'])

    ref = reference_forward(params, emb1, emb2)
    assert logits.shape == (B,)
    # bf16 MXU operands (f32 accumulation) vs. pure-f32 reference.
    assert jnp.allclose(logits, ref, rtol=3e-2, atol=3e-2), (logits, ref)

    print("KERNEL_OK")
</pallas_src>

<mosaic_0001>
module attributes {stable_mosaic.version = 11 : i64} {
  func.func @the_model_kernel(%arg0: i32, %arg1: memref<2x256xf32, #tpu.memory_space<vmem>>, %arg2: memref<2x256xf32, #tpu.memory_space<vmem>>, %arg3: memref<256x128xbf16, #tpu.memory_space<vmem>>, %arg4: memref<1x128xf32, #tpu.memory_space<vmem>>, %arg5: memref<128x128xbf16, #tpu.memory_space<vmem>>, %arg6: memref<1x128xf32, #tpu.memory_space<vmem>>, %arg7: memref<128x128xbf16, #tpu.memory_space<vmem>>, %arg8: memref<1x128xf32, #tpu.memory_space<vmem>>, %arg9: memref<128x128xbf16, #tpu.memory_space<vmem>>, %arg10: memref<1x128xf32, #tpu.memory_space<vmem>>, %arg11: memref<1x128xf32, #tpu.memory_space<vmem>>, %arg12: memref<128x16xbf16, #tpu.memory_space<vmem>>, %arg13: memref<1x16xf32, #tpu.memory_space<vmem>>, %arg14: memref<1x16xf32, #tpu.memory_space<vmem>>, %arg15: memref<1x1xf32, #tpu.memory_space<vmem>>, %arg16: memref<2x1xf32, #tpu.memory_space<vmem>>) attributes {dimension_semantics = [#tpu.dimension_semantics<parallel>], iteration_bounds = array<i64: 1>, scalar_prefetch = 0 : i64, scratch_operands = 0 : i64, tpu.core_type = #tpu.core_type<tc>, window_params = [{transform_indices = @transform_0, window_bounds = array<i64: 2, 256>}, {transform_indices = @transform_1, window_bounds = array<i64: 2, 256>}, {pipeline_mode = #tpu.pipeline_mode<synchronous>, transform_indices = @transform_2, window_bounds = array<i64: 256, 128>}, {pipeline_mode = #tpu.pipeline_mode<synchronous>, transform_indices = @transform_3, window_bounds = array<i64: 1, 128>}, {pipeline_mode = #tpu.pipeline_mode<synchronous>, transform_indices = @transform_4, window_bounds = array<i64: 128, 128>}, {pipeline_mode = #tpu.pipeline_mode<synchronous>, transform_indices = @transform_5, window_bounds = array<i64: 1, 128>}, {pipeline_mode = #tpu.pipeline_mode<synchronous>, transform_indices = @transform_6, window_bounds = array<i64: 128, 128>}, {pipeline_mode = #tpu.pipeline_mode<synchronous>, transform_indices = @transform_7, window_bounds = array<i64: 1, 128>}, {pipeline_mode = #tpu.pipeline_mode<synchronous>, transform_indices = @transform_8, window_bounds = array<i64: 128, 128>}, {pipeline_mode = #tpu.pipeline_mode<synchronous>, transform_indices = @transform_9, window_bounds = array<i64: 1, 128>}, {pipeline_mode = #tpu.pipeline_mode<synchronous>, transform_indices = @transform_10, window_bounds = array<i64: 1, 128>}, {pipeline_mode = #tpu.pipeline_mode<synchronous>, transform_indices = @transform_11, window_bounds = array<i64: 128, 16>}, {pipeline_mode = #tpu.pipeline_mode<synchronous>, transform_indices = @transform_12, window_bounds = array<i64: 1, 16>}, {pipeline_mode = #tpu.pipeline_mode<synchronous>, transform_indices = @transform_13, window_bounds = array<i64: 1, 16>}, {pipeline_mode = #tpu.pipeline_mode<synchronous>, transform_indices = @transform_14, window_bounds = array<i64: 1, 1>}, {transform_indices = @transform_15, window_bounds = array<i64: 2, 1>}]} {
    %c0 = arith.constant 0 : index
    %c0_0 = arith.constant 0 : index
    %0 = vector.load %arg1[%c0, %c0_0] : memref<2x256xf32, #tpu.memory_space<vmem>>, vector<2x256xf32>
    %c0_1 = arith.constant 0 : index
    %c0_2 = arith.constant 0 : index
    %1 = vector.load %arg2[%c0_1, %c0_2] : memref<2x256xf32, #tpu.memory_space<vmem>>, vector<2x256xf32>
    %2 = arith.subf %0, %1 : vector<2x256xf32>
    %3 = arith.truncf %2 : vector<2x256xf32> to vector<2x256xbf16>
    %c0_3 = arith.constant 0 : index
    %c0_4 = arith.constant 0 : index
    %4 = vector.load %arg3[%c0_3, %c0_4] : memref<256x128xbf16, #tpu.memory_space<vmem>>, vector<256x128xbf16>
    %cst = arith.constant dense<0.000000e+00> : vector<2x128xf32>
    %5 = tpu.matmul %3, %4, %cst {dimension_numbers = #tpu.dot_dimension_numbers<[1], [0], [0], [1], [0, 0, 1, 1], [], []>} : vector<2x256xbf16>, vector<256x128xbf16>, vector<2x128xf32> -> vector<2x128xf32>
    %c0_5 = arith.constant 0 : index
    %c0_6 = arith.constant 0 : index
    %6 = vector.load %arg4[%c0_5, %c0_6] : memref<1x128xf32, #tpu.memory_space<vmem>>, vector<1x128xf32>
    %7 = vector.broadcast %6 : vector<1x128xf32> to vector<2x128xf32>
    %8 = arith.addf %5, %7 : vector<2x128xf32>
    %cst_7 = arith.constant 0.000000e+00 : f32
    %9 = vector.broadcast %cst_7 : f32 to vector<2x128xf32>
    %10 = arith.maximumf %8, %9 : vector<2x128xf32>
    %11 = arith.truncf %10 : vector<2x128xf32> to vector<2x128xbf16>
    %c0_8 = arith.constant 0 : index
    %c0_9 = arith.constant 0 : index
    %12 = vector.load %arg5[%c0_8, %c0_9] : memref<128x128xbf16, #tpu.memory_space<vmem>>, vector<128x128xbf16>
    %cst_10 = arith.constant dense<0.000000e+00> : vector<2x128xf32>
    %13 = tpu.matmul %11, %12, %cst_10 {dimension_numbers = #tpu.dot_dimension_numbers<[1], [0], [0], [1], [0, 0, 1, 1], [], []>} : vector<2x128xbf16>, vector<128x128xbf16>, vector<2x128xf32> -> vector<2x128xf32>
    %c0_11 = arith.constant 0 : index
    %c0_12 = arith.constant 0 : index
    %14 = vector.load %arg6[%c0_11, %c0_12] : memref<1x128xf32, #tpu.memory_space<vmem>>, vector<1x128xf32>
    %15 = vector.broadcast %14 : vector<1x128xf32> to vector<2x128xf32>
    %16 = arith.addf %13, %15 : vector<2x128xf32>
    %17 = arith.truncf %16 : vector<2x128xf32> to vector<2x128xbf16>
    %c0_13 = arith.constant 0 : index
    %c0_14 = arith.constant 0 : index
    %18 = vector.load %arg7[%c0_13, %c0_14] : memref<128x128xbf16, #tpu.memory_space<vmem>>, vector<128x128xbf16>
    %cst_15 = arith.constant dense<0.000000e+00> : vector<2x128xf32>
    %19 = tpu.matmul %17, %18, %cst_15 {dimension_numbers = #tpu.dot_dimension_numbers<[1], [0], [0], [1], [0, 0, 1, 1], [], []>} : vector<2x128xbf16>, vector<128x128xbf16>, vector<2x128xf32> -> vector<2x128xf32>
    %c0_16 = arith.constant 0 : index
    %c0_17 = arith.constant 0 : index
    %20 = vector.load %arg8[%c0_16, %c0_17] : memref<1x128xf32, #tpu.memory_space<vmem>>, vector<1x128xf32>
    %21 = vector.broadcast %20 : vector<1x128xf32> to vector<2x128xf32>
    %22 = arith.addf %19, %21 : vector<2x128xf32>
    %cst_18 = arith.constant 0.000000e+00 : f32
    %23 = vector.broadcast %cst_18 : f32 to vector<2x128xf32>
    %24 = arith.maximumf %22, %23 : vector<2x128xf32>
    %25 = arith.truncf %24 : vector<2x128xf32> to vector<2x128xbf16>
    %c0_19 = arith.constant 0 : index
    %c0_20 = arith.constant 0 : index
    %26 = vector.load %arg9[%c0_19, %c0_20] : memref<128x128xbf16, #tpu.memory_space<vmem>>, vector<128x128xbf16>
    %cst_21 = arith.constant dense<0.000000e+00> : vector<2x128xf32>
    %27 = tpu.matmul %25, %26, %cst_21 {dimension_numbers = #tpu.dot_dimension_numbers<[1], [0], [0], [1], [0, 0, 1, 1], [], []>} : vector<2x128xbf16>, vector<128x128xbf16>, vector<2x128xf32> -> vector<2x128xf32>
    %c0_22 = arith.constant 0 : index
    %c0_23 = arith.constant 0 : index
    %28 = vector.load %arg10[%c0_22, %c0_23] : memref<1x128xf32, #tpu.memory_space<vmem>>, vector<1x128xf32>
    %29 = vector.broadcast %28 : vector<1x128xf32> to vector<2x128xf32>
    %30 = arith.addf %27, %29 : vector<2x128xf32>
    %31 = arith.mulf %30, %30 : vector<2x128xf32>
    %cst_24 = arith.constant dense<0.000000e+00> : vector<2xf32>
    %32 = vector.multi_reduction <add>, %31, %cst_24 [1] : vector<2x128xf32> to vector<2xf32>
    %33 = vector.shape_cast %32 : vector<2xf32> to vector<2x1xf32>
    %cst_25 = arith.constant 1.280000e+02 : f32
    %34 = vector.broadcast %cst_25 : f32 to vector<2x1xf32>
    %35 = arith.divf %33, %34 : vector<2x1xf32>
    %cst_26 = arith.constant 9.99999997E-7 : f32
    %36 = vector.broadcast %cst_26 : f32 to vector<2x1xf32>
    %37 = arith.addf %35, %36 : vector<2x1xf32>
    %38 = math.rsqrt %37 : vector<2x1xf32>
    %39 = vector.broadcast %38 : vector<2x1xf32> to vector<2x128xf32>
    %40 = arith.mulf %30, %39 : vector<2x128xf32>
    %c0_27 = arith.constant 0 : index
    %c0_28 = arith.constant 0 : index
    %41 = vector.load %arg11[%c0_27, %c0_28] : memref<1x128xf32, #tpu.memory_space<vmem>>, vector<1x128xf32>
    %42 = vector.broadcast %41 : vector<1x128xf32> to vector<2x128xf32>
    %43 = arith.mulf %40, %42 : vector<2x128xf32>
    %44 = arith.truncf %43 : vector<2x128xf32> to vector<2x128xbf16>
    %c0_29 = arith.constant 0 : index
    %c0_30 = arith.constant 0 : index
    %45 = vector.load %arg12[%c0_29, %c0_30] : memref<128x16xbf16, #tpu.memory_space<vmem>>, vector<128x16xbf16>
    %cst_31 = arith.constant dense<0.000000e+00> : vector<2x16xf32>
    %46 = tpu.matmul %44, %45, %cst_31 {dimension_numbers = #tpu.dot_dimension_numbers<[1], [0], [0], [1], [0, 0, 1, 1], [], []>} : vector<2x128xbf16>, vector<128x16xbf16>, vector<2x16xf32> -> vector<2x16xf32>
    %c0_32 = arith.constant 0 : index
    %c0_33 = arith.constant 0 : index
    %47 = vector.load %arg13[%c0_32, %c0_33] : memref<1x16xf32, #tpu.memory_space<vmem>>, vector<1x16xf32>
    %48 = vector.broadcast %47 : vector<1x16xf32> to vector<2x16xf32>
    %49 = arith.addf %46, %48 : vector<2x16xf32>
    %cst_34 = arith.constant 0.000000e+00 : f32
    %50 = vector.broadcast %cst_34 : f32 to vector<2x16xf32>
    %51 = arith.maximumf %49, %50 : vector<2x16xf32>
    %c0_35 = arith.constant 0 : index
    %c0_36 = arith.constant 0 : index
    %52 = vector.load %arg14[%c0_35, %c0_36] : memref<1x16xf32, #tpu.memory_space<vmem>>, vector<1x16xf32>
    %53 = vector.broadcast %52 : vector<1x16xf32> to vector<2x16xf32>
    %54 = arith.mulf %51, %53 : vector<2x16xf32>
    %cst_37 = arith.constant dense<0.000000e+00> : vector<2xf32>
    %55 = vector.multi_reduction <add>, %54, %cst_37 [1] : vector<2x16xf32> to vector<2xf32>
    %56 = vector.shape_cast %55 : vector<2xf32> to vector<2x1xf32>
    %c0_38 = arith.constant 0 : index
    %c0_39 = arith.constant 0 : index
    %57 = vector.load %arg15[%c0_38, %c0_39] : memref<1x1xf32, #tpu.memory_space<vmem>>, vector<1x1xf32>
    %58 = vector.broadcast %57 : vector<1x1xf32> to vector<2x1xf32>
    %59 = arith.addf %56, %58 : vector<2x1xf32>
    %c0_40 = arith.constant 0 : index
    %c0_41 = arith.constant 0 : index
    %60 = vector.load %arg16[%c0_40, %c0_41] : memref<2x1xf32, #tpu.memory_space<vmem>>, vector<2x1xf32>
    tpu.vector_store %arg16[%c0_40, %c0_41], %59 {strides = array<i32>} : memref<2x1xf32, #tpu.memory_space<vmem>>, vector<2x1xf32>,
    return
  }
  func.func @transform_0(%arg0: i32) -> (i32, i32) {
    %c0_i32 = arith.constant 0 : i32
    %c0_i32_0 = arith.constant 0 : i32
    return %arg0, %c0_i32 : i32, i32
  }
  func.func @transform_1(%arg0: i32) -> (i32, i32) {
    %c0_i32 = arith.constant 0 : i32
    %c0_i32_0 = arith.constant 0 : i32
    return %arg0, %c0_i32 : i32, i32
  }
  func.func @transform_2(%arg0: i32) -> (i32, i32) {
    %c0_i32 = arith.constant 0 : i32
    %c0_i32_0 = arith.constant 0 : i32
    %c0_i32_1 = arith.constant 0 : i32
    return %c0_i32, %c0_i32_0 : i32, i32
  }
  func.func @transform_3(%arg0: i32) -> (i32, i32) {
    %c0_i32 = arith.constant 0 : i32
    %c0_i32_0 = arith.constant 0 : i32
    %c0_i32_1 = arith.constant 0 : i32
    return %c0_i32, %c0_i32_0 : i32, i32
  }
  func.func @transform_4(%arg0: i32) -> (i32, i32) {
    %c0_i32 = arith.constant 0 : i32
    %c0_i32_0 = arith.constant 0 : i32
    %c0_i32_1 = arith.constant 0 : i32
    return %c0_i32, %c0_i32_0 : i32, i32
  }
  func.func @transform_5(%arg0: i32) -> (i32, i32) {
    %c0_i32 = arith.constant 0 : i32
    %c0_i32_0 = arith.constant 0 : i32
    %c0_i32_1 = arith.constant 0 : i32
    return %c0_i32, %c0_i32_0 : i32, i32
  }
  func.func @transform_6(%arg0: i32) -> (i32, i32) {
    %c0_i32 = arith.constant 0 : i32
    %c0_i32_0 = arith.constant 0 : i32
    %c0_i32_1 = arith.constant 0 : i32
    return %c0_i32, %c0_i32_0 : i32, i32
  }
  func.func @transform_7(%arg0: i32) -> (i32, i32) {
    %c0_i32 = arith.constant 0 : i32
    %c0_i32_0 = arith.constant 0 : i32
    %c0_i32_1 = arith.constant 0 : i32
    return %c0_i32, %c0_i32_0 : i32, i32
  }
  func.func @transform_8(%arg0: i32) -> (i32, i32) {
    %c0_i32 = arith.constant 0 : i32
    %c0_i32_0 = arith.constant 0 : i32
    %c0_i32_1 = arith.constant 0 : i32
    return %c0_i32, %c0_i32_0 : i32, i32
  }
  func.func @transform_9(%arg0: i32) -> (i32, i32) {
    %c0_i32 = arith.constant 0 : i32
    %c0_i32_0 = arith.constant 0 : i32
    %c0_i32_1 = arith.constant 0 : i32
    return %c0_i32, %c0_i32_0 : i32, i32
  }
  func.func @transform_10(%arg0: i32) -> (i32, i32) {
    %c0_i32 = arith.constant 0 : i32
    %c0_i32_0 = arith.constant 0 : i32
    %c0_i32_1 = arith.constant 0 : i32
    return %c0_i32, %c0_i32_0 : i32, i32
  }
  func.func @transform_11(%arg0: i32) -> (i32, i32) {
    %c0_i32 = arith.constant 0 : i32
    %c0_i32_0 = arith.constant 0 : i32
    %c0_i32_1 = arith.constant 0 : i32
    return %c0_i32, %c0_i32_0 : i32, i32
  }
  func.func @transform_12(%arg0: i32) -> (i32, i32) {
    %c0_i32 = arith.constant 0 : i32
    %c0_i32_0 = arith.constant 0 : i32
    %c0_i32_1 = arith.constant 0 : i32
    return %c0_i32, %c0_i32_0 : i32, i32
  }
  func.func @transform_13(%arg0: i32) -> (i32, i32) {
    %c0_i32 = arith.constant 0 : i32
    %c0_i32_0 = arith.constant 0 : i32
    %c0_i32_1 = arith.constant 0 : i32
    return %c0_i32, %c0_i32_0 : i32, i32
  }
  func.func @transform_14(%arg0: i32) -> (i32, i32) {
    %c0_i32 = arith.constant 0 : i32
    %c0_i32_0 = arith.constant 0 : i32
    %c0_i32_1 = arith.constant 0 : i32
    return %c0_i32, %c0_i32_0 : i32, i32
  }
  func.func @transform_15(%arg0: i32) -> (i32, i32) {
    %c0_i32 = arith.constant 0 : i32
    %c0_i32_0 = arith.constant 0 : i32
    return %arg0, %c0_i32 : i32, i32
  }
}

</mosaic_0001>

<bundles_post_ra>
// kernel: tpu_custom_call.1
= control target key start
LH: loop header
LB: loop body
LE: loop exit
PB: predicated region body
PF: predicated region fallthrough
CT: control target
= control target key end

     0   :  { %s1204_s0 = inlined_call_operand.vmem [shape: f32[2,256], index: 0, kind: input, shape index: {}]   ;;  %s1205_s1 = inlined_call_operand.vmem [shape: f32[2,256], index: 1, kind: input, shape index: {}]   ;;  %s1206_s2 = inlined_call_operand.hbm [shape: bf16[256,128], index: 2, kind: input, shape index: {}]   ;;  %s1207_s3 = inlined_call_operand.vmem [shape: f32[1,128], index: 3, kind: input, shape index: {}]   ;;  %s1208_s4 = inlined_call_operand.vmem [shape: bf16[128,128], index: 4, kind: input, shape index: {}]   ;;  %s1209_s5 = inlined_call_operand.vmem [shape: f32[1,128], index: 5, kind: input, shape index: {}]   ;;  %s1210_s6 = inlined_call_operand.hbm [shape: bf16[128,128], index: 6, kind: input, shape index: {}]   ;;  %s1211_s7 = inlined_call_operand.vmem [shape: f32[1,128], index: 7, kind: input, shape index: {}]   ;;  %s1212_s8 = inlined_call_operand.hbm [shape: bf16[128,128], index: 8, kind: input, shape index: {}]   ;;  %s1213_s9 = inlined_call_operand.vmem [shape: f32[1,128], index: 9, kind: input, shape index: {}]   ;;  %s1214_s10 = inlined_call_operand.hbm [shape: f32[1,128], index: 10, kind: input, shape index: {}]   ;;  %s1215_s11 = inlined_call_operand.vmem [shape: bf16[128,16], index: 11, kind: input, shape index: {}]   ;;  %s1216_s12 = inlined_call_operand.vmem [shape: f32[1,16], index: 12, kind: input, shape index: {}]   ;;  %s1217_s13 = inlined_call_operand.vmem [shape: f32[1,16], index: 13, kind: input, shape index: {}]   ;;  %s1218_s14 = inlined_call_operand.<no memory space> [shape: f32[1,1], index: 14, kind: input, shape index: {}]   ;;  %s1219_s15 = inlined_call_operand.vmem [shape: f32[2,1], index: 15, kind: output, shape index: {}]  }
   0x1   :  { %v20_v0 = vstv %s1218_s14 }
   0x2   :  { %21 = vst [vmem:[#allocation2] sm:$0x1] %v20_v0 }
   0x3   :  { %22 = vsyncpa [#allocation4], 0 }
   0x4   :  { %23 = vsyncpa [#allocation6], 0 }
   0x5   :  { %24 = vsyncpa [#allocation9], 0  ;;  %s52_s22 = sshll.u32 %s1210_s6, 4  ;;  %s1027_s23 = smov [#allocation5]   ;;  %s53_s22 = int_to_ptr.hbm [resolvable:$true] %s52_s22 }
   0x6   :  { %s54_s24 = sshll.u32 %s1027_s23, 4  ;;  %s33_s27 = sshll.u32 %s1206_s2, 4  ;;  %s55_s24 = int_to_ptr.vmem [resolvable:$true] %s54_s24  ;;  %s34_s27 = int_to_ptr.hbm [resolvable:$true] %s33_s27 }
   0x7   :  { %s1028_s28 = smov 64   ;;  %s1029_s29 = smov 4  }
   0x8   :  { %60 = dma.hbm_to_vmem [thread:$0]  %s53_s22, 1024, %s55_s24, [#allocation6], %s1028_s28, %s1028_s28, %s1029_s29  }
   0x9   :  { %s1030_s14 = smov [#allocation3]   ;;  %s67_s18 = sshll.u32 %s1212_s8, 4  ;;  %s68_s18 = int_to_ptr.hbm [resolvable:$true] %s67_s18 }
   0xa   :  { %s35_s30 = sshll.u32 %s1030_s14, 4  ;;  %s83_s20 = sshll.u32 %s1214_s10, 4  ;;  %s36_s30 = int_to_ptr.vmem [resolvable:$true] %s35_s30  ;;  %s84_s20 = int_to_ptr.hbm [resolvable:$true] %s83_s20 }
   0xb   :  { %41 = dma.hbm_to_vmem [thread:$0]  %s34_s27, 2048, %s36_s30, [#allocation4], %s1028_s28, %s1028_s28, %s1029_s29  }
   0xc   :  { %s1031_s21 = smov [#allocation7]   ;;  %s1032_s2 = smov [#allocation8]  }
   0xd   :  { %s69_s23 = sshll.u32 %s1031_s21, 4  ;;  %s85_s22 = sshll.u32 %s1032_s2, 4  ;;  %s70_s23 = int_to_ptr.vmem [resolvable:$true] %s69_s23  ;;  %s86_s22 = int_to_ptr.vmem [resolvable:$true] %s85_s22 }
   0xe   :  { %75 = dma.hbm_to_vmem [thread:$0]  %s68_s18, 1024, %s70_s23, [#allocation6], %s1028_s28, %s1028_s28, %s1029_s29  }
   0xf   :  { %88 = dma.hbm_to_vmem [thread:$0]  %s84_s20, 16, %s86_s22, [#allocation9]  }
  0x10   :  { %1021 = dma.done.wait [#allocation4], 2048  }
  0x11   :  { %1022 = vsyncadd [#allocation4], 4294965248 }
  0x12   :  { %1023 = dma.done.wait [#allocation6], 2048  }
  0x13   :  { %1024 = vsyncadd [#allocation6], 4294965248 }
  0x14   :  { %1025 = dma.done.wait [#allocation9], 16  }
  0x15   :  { %1026 = vsyncadd [#allocation9], 4294967280  ;;  %v865_v1 = vld [vmem:[#allocation3 + $0x38] sm:$0xff]  ;;  %v864_v3 = vld [vmem:[#allocation3 + $0x30] sm:$0xff]  ;;  %vm531_vm0 = vcmask 1041408   ;;  %vm648_vm5 = vcmask 123904  }
  0x16   :  { %v873_v2 = vld [vmem:[#allocation3 + $0x78] sm:$0xff]  ;;  %256 = vmatpush.bf16.msra.mxu0 %v865_v1  ;;  %v872_v4 = vld [vmem:[#allocation3 + $0x70] sm:$0xff]  ;;  %v863_v7 = vld [vmem:[#allocation3 + $0x28] sm:$0xff]  ;;  %vm657_vm6 = vcmask 1024  }
  0x17   :  { %269 = vmatpush.bf16.msra.mxu1 %v873_v2  ;;  %v113_v5 = vld [vmem:[%s1204_s0] sm:$0xf]  ;;  %v871_v8 = vld [vmem:[#allocation3 + $0x68] sm:$0xff]  ;;  %v862_v11 = vld [vmem:[#allocation3 + $0x20] sm:$0xff] }
  0x18   :  { %v114_v6 = vld [vmem:[%s1205_s1] sm:$0xf]  ;;  %v881_v10 = vld [vmem:[%s1208_s4 + $0x38] sm:$0xff]  ;;  %v870_v12 = vld [vmem:[#allocation3 + $0x60] sm:$0xff] }
  0x19   :  { %v115_v9 = vsub.f32 %v113_v5, %v114_v6  ;;  %352 = vmatpush.bf16.msra.mxu2 %v881_v10  ;;  %v880_v13 = vld [vmem:[%s1208_s4 + $0x30] sm:$0xff]  ;;  %v879_v14 = vld [vmem:[%s1208_s4 + $0x28] sm:$0xff]  ;;  %v878_v17 = vld [vmem:[%s1208_s4 + $0x20] sm:$0xff] }
  0x1a   :  { %257 = vmatpush.bf16.msra.mxu0 %v864_v3  ;;  %v861_v15 = vld [vmem:[#allocation3 + $0x18] sm:$0xff]  ;;  %v860_v18 = vld [vmem:[#allocation3 + $0x10] sm:$0xff]  ;;  %v859_v21 = vld [vmem:[#allocation3 + $0x8] sm:$0xff] }
  0x1b   :  { %270 = vmatpush.bf16.msra.mxu1 %v872_v4  ;;  %117 = vst [vmem:[#allocation1] ss:$4 sm:$0xff] %v115_v9  ;;  %v869_v16 = vld [vmem:[#allocation3 + $0x58] sm:$0xff]  ;;  %v868_v19 = vld [vmem:[#allocation3 + $0x50] sm:$0xff]  ;;  %v867_v22 = vld [vmem:[#allocation3 + $0x48] sm:$0xff] }
  0x1c   :  { %v877_v20 = vld [vmem:[%s1208_s4 + $0x18] sm:$0xff]  ;;  %v876_v23 = vld [vmem:[%s1208_s4 + $0x10] sm:$0xff]  ;;  %v875_v30 = vld [vmem:[%s1208_s4 + $0x8] sm:$0xff] }
  0x1d   :  { %353 = vmatpush.bf16.msra.mxu2 %v880_v13  ;;  %v858_v24 = vld [vmem:[#allocation3] sm:$0xff]  ;;  %v874_v31 = vld [vmem:[%s1208_s4] sm:$0xff]  ;;  %v887_v34 = vld [vmem:[#allocation5 + $0x28] sm:$0xff]  ;;  %v1033_v13 = vmov 128.0  }
  0x1e   :  { %258 = vmatpush.bf16.msra.mxu0 %v863_v7  ;;  %v866_v25 = vld [vmem:[#allocation3 + $0x40] sm:$0xff]  ;;  %v889_v32 = vld [vmem:[#allocation5 + $0x38] sm:$0xff]  ;;  %v888_v33 = vld [vmem:[#allocation5 + $0x30] sm:$0xff]  ;;  %921 = vrcp.f32 %v1033_v13 }
  0x1f   :  { %271 = vmatpush.bf16.msra.mxu1 %v871_v8  ;;  %434 = vmatpush.bf16.msra.mxu3 %v889_v32  ;;  %v886_v35 = vld [vmem:[#allocation5 + $0x20] sm:$0xff]  ;;  %v885_v36 = vld [vmem:[#allocation5 + $0x18] sm:$0xff]  ;;  %v884_v37 = vld [vmem:[#allocation5 + $0x10] sm:$0xff] }
  0x20   :  { %v913_v38 = vld [vmem:[%s1207_s3] ss:$0 sm:$0xff]  ;;  %v883_v39 = vld [vmem:[#allocation5 + $0x8] sm:$0xff]  ;;  %v882_v48 = vld [vmem:[#allocation5] sm:$0xff] }
  0x21   :  { %354 = vmatpush.bf16.msra.mxu2 %v879_v14  ;;  %v897_v49 = vld [vmem:[#allocation7 + $0x38] sm:$0xff]  ;;  %v896_v50 = vld [vmem:[#allocation7 + $0x30] sm:$0xff]  ;;  %v895_v51 = vld [vmem:[#allocation7 + $0x28] sm:$0xff] }
  0x22   :  { %259 = vmatpush.bf16.msra.mxu0 %v862_v11  ;;  %v118_v26 = vld.sshfl [vmem:[#allocation1] sm:$0xff pattern:$0x73625140]  ;;  %v119_v27 = vld.sshfl [vmem:[#allocation1 + $0x8] sm:$0xff pattern:$0x73625140] }
  0x23   :  { %272 = vmatpush.bf16.msra.mxu1 %v870_v12  ;;  %v122_v28 = vpack.c.bf16 %v118_v26, %v118_v26  ;;  %v123_v29 = vpack.c.bf16 %v119_v27, %v119_v27  ;;  %435 = vmatpush.bf16.msra.mxu3 %v888_v33  ;;  %v894_v52 = vld [vmem:[#allocation7 + $0x20] sm:$0xff]  ;;  %v893_v53 = vld [vmem:[#allocation7 + $0x18] sm:$0xff]  ;;  %v892_v54 = vld [vmem:[#allocation7 + $0x10] sm:$0xff] }
  0x24   :  { %v914_v55 = vld [vmem:[%s1209_s5] ss:$0 sm:$0xff]  ;;  %v891_v60 = vld [vmem:[#allocation7 + $0x8] sm:$0xff]  ;;  %v890_v61 = vld [vmem:[#allocation7] sm:$0xff] }
  0x25   :  { %355 = vmatpush.bf16.msra.mxu2 %v878_v17  ;;  %v915_v62 = vld [vmem:[%s1211_s7] ss:$0 sm:$0xff]  ;;  %v905_v4 = vld [vmem:[%s1215_s11 + $0x38] sm:$0xff]  ;;  %v904_v11 = vld [vmem:[%s1215_s11 + $0x30] sm:$0xff] }
  0x26   :  { %260 = vmatpush.bf16.msra.mxu0 %v861_v15  ;;  %v916_v5 = vld [vmem:[%s1213_s9] ss:$0 sm:$0xff]  ;;  %v903_v12 = vld [vmem:[%s1215_s11 + $0x28] sm:$0xff]  ;;  %v922_v15 = vpop.eup %921 }
  0x27   :  { %273 = vmatpush.bf16.msra.mxu1 %v869_v16  ;;  %436 = vmatpush.bf16.msra.mxu3 %v887_v34  ;;  %v902_v14 = vld [vmem:[%s1215_s11 + $0x20] sm:$0xff]  ;;  %v901_v16 = vld [vmem:[%s1215_s11 + $0x18] sm:$0xff]  ;;  %v536_v17 = vmul.f32 128.0, %v922_v15  ;;  %vm540_vm1 = vweird.f32 %v922_v15  ;;  %v917_v34 = vld [vmem:[#allocation8] ss:$0 sm:$0xff] }
  0x29   :  { %356 = vmatpush.bf16.msra.mxu2 %v877_v20  ;;  %v899_v20 = vld [vmem:[%s1215_s11 + $0x8] sm:$0xff] }
  0x2a   :  { %261 = vmatpush.bf16.msra.mxu0 %v860_v18  ;;  %v900_v18 = vld [vmem:[%s1215_s11 + $0x10] sm:$0xff] }
  0x2b   :  { %274 = vmatpush.bf16.msra.mxu1 %v868_v19  ;;  %437 = vmatpush.bf16.msra.mxu3 %v886_v35  ;;  %v537_v19 = vsub.f32 1.0, %v536_v17 }
  0x2d   :  { %357 = vmatpush.bf16.msra.mxu2 %v876_v23 }
  0x2e   :  { %262 = vmatpush.bf16.msra.mxu0 %v859_v21  ;;  %v538_v21 = vmul.f32 %v922_v15, %v537_v19 }
  0x2f   :  { %275 = vmatpush.bf16.msra.mxu1 %v867_v22  ;;  %438 = vmatpush.bf16.msra.mxu3 %v885_v36  ;;  %v898_v22 = vld [vmem:[%s1215_s11] sm:$0xff] }
  0x30   :  { %v539_v23 = vadd.f32 %v922_v15, %v538_v21 }
  0x31   :  { %358 = vmatpush.bf16.msra.mxu2 %v875_v30 }
  0x32   :  { %263 = vmatpush.bf16.msra.mxu0 %v858_v24  ;;  %v541_v24 = vsel %vm540_vm1, %v922_v15, %v539_v23 }
  0x33   :  { %276 = vmatpush.bf16.msra.mxu1 %v866_v25  ;;  %439 = vmatpush.bf16.msra.mxu3 %v884_v37 }
  0x35   :  { %264 = vmatmul.bf16.vlgmr.msra.gmra.mxu0 %v122_v28  ;;  %359 = vmatpush.bf16.msra.mxu2 %v874_v31 }
  0x36   :  { %277 = vmatmul.bf16.vlgmr.msra.gmra.mxu1 %v123_v29  ;;  %517 = vmatpush.bf16.msrb.mxu0 %v897_v49 }
  0x37   :  { %440 = vmatpush.bf16.msra.mxu3 %v883_v39  ;;  %629 = vmatpush.bf16.msrb.mxu1 %v905_v4  ;;  %v918_v39 = vld [vmem:[%s1216_s12] ss:$0 sm:$0xff] }
  0x3a   :  { %518 = vmatpush.bf16.msrb.mxu0 %v896_v50 }
  0x3b   :  { %441 = vmatpush.bf16.msra.mxu3 %v882_v48  ;;  %630 = vmatpush.bf16.msrb.mxu1 %v904_v11 }
  0x3e   :  { %519 = vmatpush.bf16.msrb.mxu0 %v895_v51 }
  0x3f   :  { %631 = vmatpush.bf16.msrb.mxu1 %v903_v12 }
  0x42   :  { %520 = vmatpush.bf16.msrb.mxu0 %v894_v52 }
  0x43   :  { %632 = vmatpush.bf16.msrb.mxu1 %v902_v14 }
  0x46   :  { %521 = vmatpush.bf16.msrb.mxu0 %v893_v53 }
  0x47   :  { %633 = vmatpush.bf16.msrb.mxu1 %v901_v16 }
  0x4a   :  { %522 = vmatpush.bf16.msrb.mxu0 %v892_v54 }
  0x4b   :  { %634 = vmatpush.bf16.msrb.mxu1 %v900_v18 }
  0x4e   :  { %523 = vmatpush.bf16.msrb.mxu0 %v891_v60 }
  0x4f   :  { %635 = vmatpush.bf16.msrb.mxu1 %v899_v20 }
  0x52   :  { %524 = vmatpush.bf16.msrb.mxu0 %v890_v61 }
  0x53   :  { %636 = vmatpush.bf16.msrb.mxu1 %v898_v22 }
  0xb2   :  { %v265_v40 = vpop.f32.mrf.mxu0 }
  0xb3   :  { %v278_v41 = vpop.f32.mrf.mxu1  ;;  %v266_v42 = vadd.f32 %v913_v38, %v265_v40 }
  0xb5   :  { %v279_v43 = vadd.f32 %v278_v41, %v266_v42  ;;  %v919_v42 = vld [vmem:[%s1217_s13] ss:$0 sm:$0xff] }
  0xb7   :  { %v282_v44 = vmax.f32 %v279_v43, 0.0 }
  0xb9   :  { %v283_v45 = vpack.c.bf16 %v282_v44, %v282_v44 }
  0xba   :  { %v267_v46 = vpop.f32.mrf.mxu0 }
  0xbb   :  { %v280_v47 = vpop.f32.mrf.mxu1  ;;  %360 = vmatmul.bf16.vlgmr.msra.gmra.mxu2 %v283_v45 }
  0xbc   :  { %v920_v47 = vld [vmem:[#allocation2] ss:$0 sm:$0xff] }
 0x13e   :  { %v361_v56 = vpop.f32.mrf.mxu2 }
 0x13f   :  { %v362_v57 = vadd.f32 %v914_v55, %v361_v56 }
 0x141   :  { %v365_v58 = vpack.c.bf16 %v362_v57, %v362_v57 }
 0x143   :  { %442 = vmatmul.bf16.vlgmr.msra.gmra.mxu3 %v365_v58 }
 0x146   :  { %v363_v59 = vpop.f32.mrf.mxu2 }
 0x1c6   :  { %v443_v63 = vpop.f32.mrf.mxu3 }
 0x1c7   :  { %v444_v0 = vadd.f32 %v915_v62, %v443_v63 }
 0x1c9   :  { %v447_v1 = vmax.f32 %v444_v0, 0.0 }
 0x1cb   :  { %v448_v2 = vpack.c.bf16 %v447_v1, %v447_v1 }
 0x1cd   :  { %525 = vmatmul.bf16.vlgmr.msrb.gmra.mxu0 %v448_v2 }
 0x1ce   :  { %v445_v3 = vpop.f32.mrf.mxu3 }
 0x24a   :  { %v526_v6 = vpop.f32.mrf.mxu0 }
 0x24b   :  { %v527_v7 = vadd.f32 %v916_v5, %v526_v6 }
 0x24d   :  { %v530_v8 = vmul.f32 %v527_v7, %v527_v7 }
 0x24f   :  { %v532_v9 = vsel %vm531_vm0, %v530_v8, 0.0 }
 0x250   :  { %533 = vadd.xlane.f32.xlu0 %v532_v9 }
 0x252   :  { %v528_v10 = vpop.f32.mrf.mxu0 }
 0x2c3   :  { %v534_v25 = vpop.xlane.xlu0 %533 }
 0x2c4   :  { %v542_v26 = vmul.f32 %v541_v24, %v534_v25 }
 0x2c6   :  { %v543_v27 = vadd.f32 1e-06, %v542_v26 }
 0x2c8   :  { %923 = vrsqrt.f32 %v543_v27  ;;  %vm550_vm3 = vweird.f32 %v543_v27 }
 0x2ce   :  { %v924_v28 = vpop.eup %923 }
 0x2cf   :  { %v545_v29 = vmul.f32 %v924_v28, %v543_v27  ;;  %vm551_vm2 = vweird.f32 %v924_v28 }
 0x2d0   :  { %vm552_vm4 = vmor %vm550_vm3, %vm551_vm2 }
 0x2d1   :  { %v546_v30 = vmul.f32 %v924_v28, %v545_v29 }
 0x2d3   :  { %v547_v31 = vmul.f32 0.5, %v546_v30 }
 0x2d5   :  { %v548_v32 = vsub.f32 1.5, %v547_v31 }
 0x2d7   :  { %v549_v33 = vmul.f32 %v924_v28, %v548_v32 }
 0x2d9   :  { %v553_v35 = vsel %vm552_vm4, %v924_v28, %v549_v33 }
 0x2da   :  { %v554_v36 = vmul.f32 %v553_v35, %v527_v7 }
 0x2dc   :  { %v559_v37 = vmul.f32 %v917_v34, %v554_v36 }
 0x2de   :  { %v560_v38 = vpack.c.bf16 %v559_v37, %v559_v37 }
 0x2e0   :  { %637 = vmatmul.bf16.vlgmr.msrb.gmra.mxu1 %v560_v38 }
 0x35d   :  { %v638_v40 = vpop.f32.mrf.mxu1 }
 0x35e   :  { %v639_v41 = vadd.f32 %v918_v39, %v638_v40 }
 0x360   :  { %v642_v43 = vmax.f32 %v639_v41, 0.0 }
 0x362   :  { %v647_v44 = vmul.f32 %v919_v42, %v642_v43 }
 0x364   :  { %v649_v45 = vsel %vm648_vm5, %v647_v44, 0.0 }
 0x365   :  { %v640_v46 = vpop.f32.mrf.mxu1  ;;  %650 = vadd.xlane.f32.xlu0 %v649_v45 }
 0x3d8   :  { %v651_v48 = vpop.xlane.xlu0 %650 }
 0x3d9   :  { %v656_v49 = vadd.f32 %v920_v47, %v651_v48 }
 0x3db   :  { %658 = vst.msk [vmem:[%s1219_s15] sm:$0x3] %vm657_vm6, %v656_v49 }
 0x3dc   :  { %663 = vsyncpa [#allocation4], 1 }
 0x3dd   :  { %664 = vsyncpa [#allocation6], 1 }
 0x3de   :  { %665 = vsyncpa [#allocation9], 1 }

</bundles_post_ra>
